<compile_context>
chip_gen: v7x
topology: tpu7x:2x2x1
jax: 0.10.0
libtpu: 0.0.40
codegen_flags: <defaults>
</compile_context>

<pallas_src>
import functools

import jax
import jax.numpy as jnp
from jax.experimental import pallas as pl
from jax.experimental.pallas import tpu as pltpu


def _round_up(x, m):
    return ((x + m - 1) // m) * m


def _epilogue(h1_state, act_ref, w1a_ref, b1_ref, w2_ref, b2_ref, w3p_ref,
              b3_ref, out_ref, compute_dtype):
    """Action branch of layer 1 + layers 2/3 + lane-dense store.

    h1_state: f32 (TB, H) state contribution of layer 1 (summed over all K).
    """
    a = act_ref[...].astype(compute_dtype)
    w1a = w1a_ref[...].astype(compute_dtype)
    h1 = h1_state + jnp.dot(a, w1a, preferred_element_type=jnp.float32)
    h1 = jnp.maximum(h1 + b1_ref[...], 0.0)                       # f32 (TB, H)

    h2 = jnp.dot(h1.astype(compute_dtype), w2_ref[...].astype(compute_dtype),
                 preferred_element_type=jnp.float32)
    h2 = jnp.maximum(h2 + b2_ref[...], 0.0)                       # f32 (TB, H)

    # Layer 3 with the batch on the LANE axis: (8, H) @ (TB, H)^T -> (8, TB);
    # only row 0 carries the real head (rows 1..7 are zero padding baked at
    # init).  Keeps the output store lane-dense instead of a (TB, 1) column.
    q8 = jax.lax.dot_general(
        w3p_ref[...].astype(compute_dtype), h2.astype(compute_dtype),
        (((1,), (1,)), ((), ())), preferred_element_type=jnp.float32)
    out_ref[...] = (q8[0:1, :] + b3_ref[0, 0]).astype(out_ref.dtype)


def _critic_kernel_resident(sf_ref, act_ref, w1s_ref, w1a_ref, b1_ref, w2_ref,
                            b2_ref, w3p_ref, b3_ref, out_ref, *, compute_dtype):
    """grid=(nb,): w1_state fully VMEM-resident; one shot per batch tile."""
    h1_state = jnp.dot(sf_ref[...].astype(compute_dtype),
                       w1s_ref[...].astype(compute_dtype),
                       preferred_element_type=jnp.float32)
    _epilogue(h1_state, act_ref, w1a_ref, b1_ref, w2_ref, b2_ref, w3p_ref,
              b3_ref, out_ref, compute_dtype)


def _critic_kernel_ktiled(sf_ref, act_ref, w1s_ref, w1a_ref, b1_ref, w2_ref,
                          b2_ref, w3p_ref, b3_ref, out_ref, acc_ref,
                          *, compute_dtype):
    """grid=(nb, nk), nk >= 2: layer-1 state contribution accumulates over K."""
    k = pl.program_id(1)
    nk = pl.num_programs(1)

    partial = jnp.dot(sf_ref[...].astype(compute_dtype),
                      w1s_ref[...].astype(compute_dtype),
                      preferred_element_type=jnp.float32)

    @pl.when(k == 0)
    def _():                                   # first slab: direct write, no zero-fill
        acc_ref[...] = partial

    @pl.when(jnp.logical_and(k > 0, k < nk - 1))
    def _():
        acc_ref[...] += partial

    @pl.when(k == nk - 1)                      # nk >= 2 so never coincides with k == 0
    def _():
        _epilogue(acc_ref[...] + partial, act_ref, w1a_ref, b1_ref, w2_ref,
                  b2_ref, w3p_ref, b3_ref, out_ref, compute_dtype)


def portfolio_critic_forward(state, action, params, *,
                             compute_dtype=jnp.bfloat16,
                             batch_tile=512, k_tile=2048,
                             weight_resident_bytes=12 * 1024 * 1024):
    """Equivalent of PortfolioCriticModel.forward(state, action).

    state : (B, num_stocks, window_size, factor_dim) float32
    action: (B, action_dim)                          float32
    returns (B, 1) float32 Q-value.

    weight_resident_bytes: keep w1_state fully VMEM-resident (no K grid axis)
    when it fits this budget.  Default is v7x-safe (64 MiB physical VMEM);
    v5e/v6e (128 MiB physical) can raise it — vmem_limit_bytes is then set
    automatically below.
    """
    B = state.shape[0]
    state_flat = state.reshape(B, -1)                 # row-major flatten (B, Ds)
    Ds = state_flat.shape[1]
    Da = action.shape[1]

    w1s, w1a = params["w1_state"], params["w1_action"]
    b1, w2, b2 = params["b1"], params["w2"], params["b2"]
    w3p, b3 = params["w3"], params["b3"]              # (8, H) row-padded head, (1, 1)
    H = w1s.shape[1]
    Ds_pad = w1s.shape[0]                             # K-padding baked at init (mult of 128)
    assert Ds_pad >= Ds

    # ---- batch tiling ----------------------------------------------------
    B8 = _round_up(B, 8)
    # v7x has 2 TensorCores; the "parallel" batch axis is the only cross-core
    # parallelism, so force nb >= 2 whenever the batch is big enough that each
    # tile still has decent sublane occupancy.  No-op on v5e/v6e.
    nb_target = max(pl.cdiv(B8, batch_tile), 2 if B8 >= 128 else 1)
    TB = _round_up(pl.cdiv(B8, nb_target), 8)
    nb = pl.cdiv(B8, TB)
    B_pad = nb * TB

    # ---- K tiling ----------------------------------------------------------
    w1s_bytes = Ds_pad * H * w1s.dtype.itemsize
    if Ds_pad % 128 != 0:
        TK = Ds_pad                                   # full-K block (equals array dim)
    elif w1s_bytes <= weight_resident_bytes:
        TK = Ds_pad                                   # fully resident, no K axis
    else:
        # Largest multiple-of-128 divisor of Ds_pad that is <= k_tile, so no
        # extra K-pad pass over the activations or the weight is ever needed.
        TK = 128
        cand = 256
        while cand <= min(k_tile, Ds_pad):
            if Ds_pad % cand == 0:
                TK = cand
            cand += 128
    nk = Ds_pad // TK
    resident = (nk == 1)

    # ---- single fused pad (+ bf16 cast) pass over the activations ----------
    pad_b = B_pad - B
    pad_k = Ds_pad - Ds
    if pad_b or pad_k:
        # One pass: pad both axes at once and write the result directly in the
        # compute dtype, halving the kernel's dominant HBM stream.  (A
        # standalone cast with no pad would be a net loss, so it is skipped.)
        state_in = jnp.pad(state_flat, ((0, pad_b), (0, pad_k))).astype(compute_dtype)
        action_in = jnp.pad(action, ((0, pad_b), (0, 0))).astype(compute_dtype)
    else:
        state_in, action_in = state_flat, action      # kernel casts in VMEM

    # ---- cost estimate (reflects actual HBM traffic: w1s re-read nb× when
    # K-tiled, once when resident; other weights are resident across the grid).
    flops = 2 * B_pad * (Ds_pad * H + Da * H + H * H + 8 * H)
    bytes_accessed = int(
        B_pad * Ds_pad * state_in.dtype.itemsize
        + B_pad * Da * action_in.dtype.itemsize
        + w1s_bytes * (1 if resident else nb)
        + sum(int(a.size) * a.dtype.itemsize for a in (w1a, b1, w2, b2, w3p, b3))
        + B_pad * 4)

    # ---- VMEM budget / scoped-limit override --------------------------------
    # Conservative resident-set estimate (double-buffered slabs + f32 temps).
    # v7x: 64 MiB physical / 32 MiB default scoped; v6e: 128 / 32; v5e: 128 / 16.
    itm_act = state_in.dtype.itemsize
    vmem_est = (2 * TB * TK * itm_act                          # state slabs
                + 2 * TK * H * w1s.dtype.itemsize              # w1s slab(s)
                + 2 * TB * Da * action_in.dtype.itemsize
                + 2 * Da * H * w1a.dtype.itemsize
                + 2 * H * H * w2.dtype.itemsize
                + 2 * (2 * H + 8 * H + 1) * 4                  # biases + head
                + (0 if resident else TB * H * 4)              # K accumulator
                + 3 * TB * H * 4                               # f32 epilogue temps
                + 2 * TB * 4)                                  # out slabs
    compiler_kwargs = {}
    if vmem_est > (14 << 20):          # past v5e's 16 MiB default scoped VMEM
        compiler_kwargs["vmem_limit_bytes"] = int(
            min(vmem_est * 5 // 4 + (4 << 20), 64 << 20))      # cap: v7x physical

    # ---- specs / kernel selection -------------------------------------------
    if resident:
        grid = (nb,)
        dims = ("parallel",)
        in_specs = [
            pl.BlockSpec((TB, TK), lambda b: (b, 0)),          # state tile
            pl.BlockSpec((TB, Da), lambda b: (b, 0)),          # action tile
            pl.BlockSpec((TK, H), lambda b: (0, 0)),           # w1_state (resident)
            pl.BlockSpec((Da, H), lambda b: (0, 0)),           # w1_action
            pl.BlockSpec((1, H), lambda b: (0, 0)),            # b1
            pl.BlockSpec((H, H), lambda b: (0, 0)),            # w2
            pl.BlockSpec((1, H), lambda b: (0, 0)),            # b2
            pl.BlockSpec((8, H), lambda b: (0, 0)),            # w3 (row-padded head)
            pl.BlockSpec(memory_space=pltpu.MemorySpace.SMEM), # b3 scalar
        ]
        out_spec = pl.BlockSpec((1, TB), lambda b: (0, b))
        kernel = functools.partial(_critic_kernel_resident,
                                   compute_dtype=compute_dtype)
        scratch = []
    else:
        grid = (nb, nk)
        dims = ("parallel", "arbitrary")
        in_specs = [
            pl.BlockSpec((TB, TK), lambda b, k: (b, k)),       # state slab
            pl.BlockSpec((TB, Da), lambda b, k: (b, 0)),       # action (resident over k)
            pl.BlockSpec((TK, H), lambda b, k: (k, 0)),        # w1_state slab
            pl.BlockSpec((Da, H), lambda b, k: (0, 0)),        # w1_action
            pl.BlockSpec((1, H), lambda b, k: (0, 0)),         # b1
            pl.BlockSpec((H, H), lambda b, k: (0, 0)),         # w2
            pl.BlockSpec((1, H), lambda b, k: (0, 0)),         # b2
            pl.BlockSpec((8, H), lambda b, k: (0, 0)),         # w3 (row-padded head)
            pl.BlockSpec(memory_space=pltpu.MemorySpace.SMEM), # b3 scalar
        ]
        out_spec = pl.BlockSpec((1, TB), lambda b, k: (0, b))
        kernel = functools.partial(_critic_kernel_ktiled,
                                   compute_dtype=compute_dtype)
        scratch = [pltpu.VMEM((TB, H), jnp.float32)]

    out = pl.pallas_call(
        kernel,
        out_shape=jax.ShapeDtypeStruct((1, B_pad), jnp.float32),
        grid=grid,
        in_specs=in_specs,
        out_specs=out_spec,
        scratch_shapes=scratch,
        compiler_params=pltpu.CompilerParams(dimension_semantics=dims,
                                             **compiler_kwargs),
        cost_estimate=pl.CostEstimate(flops=flops, transcendentals=0,
                                      bytes_accessed=bytes_accessed),
    )(state_in, action_in, w1s, w1a, b1, w2, b2, w3p, b3)

    return out[0, :B].reshape(B, 1)


def init_params(key, factor_dim, window_size, num_stocks, action_dim, hidden,
                param_dtype=jnp.bfloat16):
    d_state = num_stocks * window_size * factor_dim
    d_state_pad = _round_up(d_state, 128)      # bake lane-aligned K padding here
    d_in = d_state + action_dim
    k1, k2, k3, k4 = jax.random.split(key, 4)
    s1 = 1.0 / jnp.sqrt(jnp.float32(d_in))
    s2 = 1.0 / jnp.sqrt(jnp.float32(hidden))

    w1s = jax.random.normal(k1, (d_state, hidden), jnp.float32) * s1
    w1s = jnp.pad(w1s, ((0, d_state_pad - d_state), (0, 0)))   # zero rows: exact no-op

    w3 = jax.random.normal(k4, (1, hidden), jnp.float32) * s2
    # Pad the (1, H) head to 8 sublanes (rows 1..7 zero) at init so layer 3 is
    # a regular sublane-aligned MXU matmul with no per-forward work.
    w3p = jnp.zeros((8, hidden), jnp.float32).at[0].set(w3[0])

    return {
        # Layer-1 weight split by input rows (state block / action block) so
        # the kernel never needs a concatenated (B, D_in) activation.
        "w1_state": w1s.astype(param_dtype),
        "w1_action": (jax.random.normal(k2, (action_dim, hidden), jnp.float32) * s1
                      ).astype(param_dtype),
        "b1": jnp.zeros((1, hidden), jnp.float32),
        "w2": (jax.random.normal(k3, (hidden, hidden), jnp.float32) * s2
               ).astype(param_dtype),
        "b2": jnp.zeros((1, hidden), jnp.float32),
        "w3": w3p.astype(param_dtype),          # (8, H), only row 0 is real
        "b3": jnp.zeros((1, 1), jnp.float32),
    }


if __name__ == "__main__":
    # Small shapes consistent with the module's constructor arguments.
    B = 2
    factor_dim = 4
    window_size = 8
    num_stocks = 8
    action_dim = num_stocks     # portfolio weights over num_stocks
    hidden = 128                # multiple of 128: full MXU / vreg lane usage

    key = jax.random.PRNGKey(0)
    k_state, k_action, k_params = jax.random.split(key, 3)

    state = jax.random.normal(
        k_state, (B, num_stocks, window_size, factor_dim), jnp.float32)
    action = jax.nn.softmax(
        jax.random.normal(k_action, (B, action_dim), jnp.float32), axis=-1)

    params = init_params(k_params, factor_dim, window_size, num_stocks,
                         action_dim, hidden, param_dtype=jnp.bfloat16)

    # Pure-JAX reference with identical bf16 operands / f32 accumulation.
    cdt = jnp.bfloat16
    sf = state.reshape(B, -1)
    Ds = sf.shape[1]
    h1 = jnp.maximum(
        jnp.dot(sf.astype(cdt), params["w1_state"][:Ds],
                preferred_element_type=jnp.float32)
        + jnp.dot(action.astype(cdt), params["w1_action"],
                  preferred_element_type=jnp.float32)
        + params["b1"], 0.0)
    h2 = jnp.maximum(
        jnp.dot(h1.astype(cdt), params["w2"],
                preferred_element_type=jnp.float32) + params["b2"], 0.0)
    ref = (jnp.dot(h2.astype(cdt), params["w3"][0:1].T,
                   preferred_element_type=jnp.float32) + params["b3"])

    # Path 1: w1_state-resident variant (default at these sizes).
    fwd = jax.jit(functools.partial(portfolio_critic_forward,
                                    compute_dtype=jnp.bfloat16))
    value = jax.block_until_ready(fwd(state, action, params))
    assert value.shape == (B, 1)
    assert jnp.allclose(value, ref, atol=5e-2, rtol=5e-2), (value, ref)

    # Path 2: force the K-tiled accumulator variant to exercise that kernel too.
    fwd_kt = jax.jit(functools.partial(portfolio_critic_forward,
                                       compute_dtype=jnp.bfloat16,
                                       weight_resident_bytes=0, k_tile=128))
    value_kt = jax.block_until_ready(fwd_kt(state, action, params))
    assert value_kt.shape == (B, 1)
    assert jnp.allclose(value_kt, ref, atol=5e-2, rtol=5e-2), (value_kt, ref)

    print("KERNEL_OK")
</pallas_src>

<mosaic_0001>
module attributes {stable_mosaic.version = 11 : i64} {
  func.func @_critic_kernel_resident(%arg0: i32, %arg1: memref<8x256xbf16, #tpu.memory_space<vmem>>, %arg2: memref<8x8xbf16, #tpu.memory_space<vmem>>, %arg3: memref<256x128xbf16, #tpu.memory_space<vmem>>, %arg4: memref<8x128xbf16, #tpu.memory_space<vmem>>, %arg5: memref<1x128xf32, #tpu.memory_space<vmem>>, %arg6: memref<128x128xbf16, #tpu.memory_space<vmem>>, %arg7: memref<1x128xf32, #tpu.memory_space<vmem>>, %arg8: memref<8x128xbf16, #tpu.memory_space<vmem>>, %arg9: memref<1x1xf32, #tpu.memory_space<smem>>, %arg10: memref<1x8xf32, #tpu.memory_space<vmem>>) attributes {dimension_semantics = [#tpu.dimension_semantics<parallel>], iteration_bounds = array<i64: 1>, scalar_prefetch = 0 : i64, scratch_operands = 0 : i64, tpu.core_type = #tpu.core_type<tc>, window_params = [{transform_indices = @transform_0, window_bounds = array<i64: 8, 256>}, {transform_indices = @transform_1, window_bounds = array<i64: 8, 8>}, {pipeline_mode = #tpu.pipeline_mode<synchronous>, transform_indices = @transform_2, window_bounds = array<i64: 256, 128>}, {pipeline_mode = #tpu.pipeline_mode<synchronous>, transform_indices = @transform_3, window_bounds = array<i64: 8, 128>}, {pipeline_mode = #tpu.pipeline_mode<synchronous>, transform_indices = @transform_4, window_bounds = array<i64: 1, 128>}, {pipeline_mode = #tpu.pipeline_mode<synchronous>, transform_indices = @transform_5, window_bounds = array<i64: 128, 128>}, {pipeline_mode = #tpu.pipeline_mode<synchronous>, transform_indices = @transform_6, window_bounds = array<i64: 1, 128>}, {pipeline_mode = #tpu.pipeline_mode<synchronous>, transform_indices = @transform_7, window_bounds = array<i64: 8, 128>}, {transform_indices = @transform_8, window_bounds = array<i64: 1, 1>}, {transform_indices = @transform_9, window_bounds = array<i64: 1, 8>}]} {
    %c0 = arith.constant 0 : index
    %c0_0 = arith.constant 0 : index
    %0 = vector.load %arg1[%c0, %c0_0] : memref<8x256xbf16, #tpu.memory_space<vmem>>, vector<8x256xbf16>
    %c0_1 = arith.constant 0 : index
    %c0_2 = arith.constant 0 : index
    %1 = vector.load %arg3[%c0_1, %c0_2] : memref<256x128xbf16, #tpu.memory_space<vmem>>, vector<256x128xbf16>
    %cst = arith.constant dense<0.000000e+00> : vector<8x128xf32>
    %2 = tpu.matmul %0, %1, %cst {dimension_numbers = #tpu.dot_dimension_numbers<[1], [0], [0], [1], [0, 0, 1, 1], [], []>} : vector<8x256xbf16>, vector<256x128xbf16>, vector<8x128xf32> -> vector<8x128xf32>
    %c0_3 = arith.constant 0 : index
    %c0_4 = arith.constant 0 : index
    %3 = vector.load %arg2[%c0_3, %c0_4] : memref<8x8xbf16, #tpu.memory_space<vmem>>, vector<8x8xbf16>
    %c0_5 = arith.constant 0 : index
    %c0_6 = arith.constant 0 : index
    %4 = vector.load %arg4[%c0_5, %c0_6] : memref<8x128xbf16, #tpu.memory_space<vmem>>, vector<8x128xbf16>
    %cst_7 = arith.constant dense<0.000000e+00> : vector<8x128xf32>
    %5 = tpu.matmul %3, %4, %cst_7 {dimension_numbers = #tpu.dot_dimension_numbers<[1], [0], [0], [1], [0, 0, 1, 1], [], []>} : vector<8x8xbf16>, vector<8x128xbf16>, vector<8x128xf32> -> vector<8x128xf32>
    %6 = arith.addf %2, %5 : vector<8x128xf32>
    %c0_8 = arith.constant 0 : index
    %c0_9 = arith.constant 0 : index
    %7 = vector.load %arg5[%c0_8, %c0_9] : memref<1x128xf32, #tpu.memory_space<vmem>>, vector<1x128xf32>
    %8 = vector.broadcast %7 : vector<1x128xf32> to vector<8x128xf32>
    %9 = arith.addf %6, %8 : vector<8x128xf32>
    %cst_10 = arith.constant 0.000000e+00 : f32
    %10 = vector.broadcast %cst_10 : f32 to vector<8x128xf32>
    %11 = arith.maximumf %9, %10 : vector<8x128xf32>
    %12 = arith.truncf %11 : vector<8x128xf32> to vector<8x128xbf16>
    %c0_11 = arith.constant 0 : index
    %c0_12 = arith.constant 0 : index
    %13 = vector.load %arg6[%c0_11, %c0_12] : memref<128x128xbf16, #tpu.memory_space<vmem>>, vector<128x128xbf16>
    %cst_13 = arith.constant dense<0.000000e+00> : vector<8x128xf32>
    %14 = tpu.matmul %12, %13, %cst_13 {dimension_numbers = #tpu.dot_dimension_numbers<[1], [0], [0], [1], [0, 0, 1, 1], [], []>} : vector<8x128xbf16>, vector<128x128xbf16>, vector<8x128xf32> -> vector<8x128xf32>
    %c0_14 = arith.constant 0 : index
    %c0_15 = arith.constant 0 : index
    %15 = vector.load %arg7[%c0_14, %c0_15] : memref<1x128xf32, #tpu.memory_space<vmem>>, vector<1x128xf32>
    %16 = vector.broadcast %15 : vector<1x128xf32> to vector<8x128xf32>
    %17 = arith.addf %14, %16 : vector<8x128xf32>
    %cst_16 = arith.constant 0.000000e+00 : f32
    %18 = vector.broadcast %cst_16 : f32 to vector<8x128xf32>
    %19 = arith.maximumf %17, %18 : vector<8x128xf32>
    %c0_17 = arith.constant 0 : index
    %c0_18 = arith.constant 0 : index
    %20 = vector.load %arg8[%c0_17, %c0_18] : memref<8x128xbf16, #tpu.memory_space<vmem>>, vector<8x128xbf16>
    %21 = arith.truncf %19 : vector<8x128xf32> to vector<8x128xbf16>
    %cst_19 = arith.constant dense<0.000000e+00> : vector<8x8xf32>
    %22 = tpu.matmul %20, %21, %cst_19 {dimension_numbers = #tpu.dot_dimension_numbers<[1], [1], [0], [0], [0, 0, 1, 0], [], []>} : vector<8x128xbf16>, vector<8x128xbf16>, vector<8x8xf32> -> vector<8x8xf32>
    %23 = vector.extract_strided_slice %22 {offsets = [0, 0], sizes = [1, 8], strides = [1, 1]} : vector<8x8xf32> to vector<1x8xf32>
    %c0_20 = arith.constant 0 : index
    %c0_21 = arith.constant 0 : index
    %24 = memref.load %arg9[%c0_20, %c0_21] : memref<1x1xf32, #tpu.memory_space<smem>>
    %25 = vector.broadcast %24 : f32 to vector<1x8xf32>
    %26 = arith.addf %23, %25 : vector<1x8xf32>
    %c0_22 = arith.constant 0 : index
    %c0_23 = arith.constant 0 : index
    %27 = vector.load %arg10[%c0_22, %c0_23] : memref<1x8xf32, #tpu.memory_space<vmem>>, vector<1x8xf32>
    tpu.vector_store %arg10[%c0_22, %c0_23], %26 {strides = array<i32>} : memref<1x8xf32, #tpu.memory_space<vmem>>, vector<1x8xf32>,
    return
  }
  func.func @transform_0(%arg0: i32) -> (i32, i32) {
    %c0_i32 = arith.constant 0 : i32
    %c0_i32_0 = arith.constant 0 : i32
    return %arg0, %c0_i32 : i32, i32
  }
  func.func @transform_1(%arg0: i32) -> (i32, i32) {
    %c0_i32 = arith.constant 0 : i32
    %c0_i32_0 = arith.constant 0 : i32
    return %arg0, %c0_i32 : i32, i32
  }
  func.func @transform_2(%arg0: i32) -> (i32, i32) {
    %c0_i32 = arith.constant 0 : i32
    %c0_i32_0 = arith.constant 0 : i32
    %c0_i32_1 = arith.constant 0 : i32
    return %c0_i32, %c0_i32_0 : i32, i32
  }
  func.func @transform_3(%arg0: i32) -> (i32, i32) {
    %c0_i32 = arith.constant 0 : i32
    %c0_i32_0 = arith.constant 0 : i32
    %c0_i32_1 = arith.constant 0 : i32
    return %c0_i32, %c0_i32_0 : i32, i32
  }
  func.func @transform_4(%arg0: i32) -> (i32, i32) {
    %c0_i32 = arith.constant 0 : i32
    %c0_i32_0 = arith.constant 0 : i32
    %c0_i32_1 = arith.constant 0 : i32
    return %c0_i32, %c0_i32_0 : i32, i32
  }
  func.func @transform_5(%arg0: i32) -> (i32, i32) {
    %c0_i32 = arith.constant 0 : i32
    %c0_i32_0 = arith.constant 0 : i32
    %c0_i32_1 = arith.constant 0 : i32
    return %c0_i32, %c0_i32_0 : i32, i32
  }
  func.func @transform_6(%arg0: i32) -> (i32, i32) {
    %c0_i32 = arith.constant 0 : i32
    %c0_i32_0 = arith.constant 0 : i32
    %c0_i32_1 = arith.constant 0 : i32
    return %c0_i32, %c0_i32_0 : i32, i32
  }
  func.func @transform_7(%arg0: i32) -> (i32, i32) {
    %c0_i32 = arith.constant 0 : i32
    %c0_i32_0 = arith.constant 0 : i32
    %c0_i32_1 = arith.constant 0 : i32
    return %c0_i32, %c0_i32_0 : i32, i32
  }
  func.func @transform_8(%arg0: i32) -> (i32, i32) {
    %c0_i32 = arith.constant 0 : i32
    %c0_i32_0 = arith.constant 0 : i32
    %c0_i32_1 = arith.constant 0 : i32
    return %c0_i32, %c0_i32_0 : i32, i32
  }
  func.func @transform_9(%arg0: i32) -> (i32, i32) {
    %c0_i32 = arith.constant 0 : i32
    %c0_i32_0 = arith.constant 0 : i32
    return %c0_i32, %arg0 : i32, i32
  }
}

</mosaic_0001>

<bundles_post_ra>
// kernel: portfolio_critic_forward.1
= control target key start
LH: loop header
LB: loop body
LE: loop exit
PB: predicated region body
PF: predicated region fallthrough
CT: control target
= control target key end

     0   :  { %v557_v1 = vmov 0.0   ;;  %vm558_vm0 = vmmov 0   ;;  %vm73_vm1 = vcmask 1043456   ;;  %vm69_vm2 = vcmask 64512   ;;  %s721_s2 = inlined_call_operand.vmem [shape: bf16[256,128], index: 2, kind: input, shape index: {}]   ;;  %s722_s3 = inlined_call_operand.vmem [shape: bf16[8,128], index: 3, kind: input, shape index: {}]   ;;  %s723_s0 = inlined_call_operand.vmem [shape: bf16[8,256], index: 0, kind: input, shape index: {}]   ;;  %s724_s1 = inlined_call_operand.vmem [shape: bf16[8,8], index: 1, kind: input, shape index: {}]   ;;  %s725_s5 = inlined_call_operand.vmem [shape: bf16[128,128], index: 5, kind: input, shape index: {}]   ;;  %s726_s4 = inlined_call_operand.vmem [shape: f32[1,128], index: 4, kind: input, shape index: {}]   ;;  %s727_s6 = inlined_call_operand.vmem [shape: f32[1,128], index: 6, kind: input, shape index: {}]   ;;  %s728_s7 = inlined_call_operand.vmem [shape: bf16[8,128], index: 7, kind: input, shape index: {}]   ;;  %s729_s8 = inlined_call_operand.<no memory space> [shape: f32[1,1], index: 8, kind: input, shape index: {}]   ;;  %s730_s9 = inlined_call_operand.vmem [shape: f32[1,8], index: 9, kind: output, shape index: {}]  }
   0x1   :  { %v531_v0 = vld [vmem:[%s721_s2 + $0x40] sm:$0xff]   ;;  %497 = vmatprep.subr.bf16.mxu0 %v557_v1  ;;  %499 = vmatprep.mubr.msk.bf16.mxu0 %vm558_vm0, %v557_v1  ;;  %v533_v3 = vld [vmem:[%s721_s2 + $0x48] sm:$0xff]   ;;  %v535_v5 = vld [vmem:[%s721_s2 + $0x50] sm:$0xff]   ;;  %v425_v54 = vstv %s729_s8  ;;  %vm427_vm3 = vcmask 57344  }
   0x2   :  { %v532_v2 = vld [vmem:[%s721_s2] sm:$0xff]   ;;  %464 = vmatprep.subr.bf16.mxu1 %v531_v0  ;;  %v534_v4 = vld [vmem:[%s721_s2 + $0x8] sm:$0xff]   ;;  %v536_v6 = vld [vmem:[%s721_s2 + $0x10] sm:$0xff]  }
   0x3   :  { %465 = vmatpush3.bf16.msra.mxu1 %v532_v2  ;;  %v537_v7 = vld [vmem:[%s721_s2 + $0x58] sm:$0xff]   ;;  %v539_v9 = vld [vmem:[%s721_s2 + $0x60] sm:$0xff]   ;;  %v541_v12 = vld [vmem:[%s721_s2 + $0x68] sm:$0xff]  }
   0x4   :  { %466 = vmatprep.subr.bf16.mxu1 %v533_v3  ;;  %v538_v8 = vld [vmem:[%s721_s2 + $0x18] sm:$0xff]   ;;  %v540_v10 = vld [vmem:[%s721_s2 + $0x20] sm:$0xff]   ;;  %v542_v18 = vld [vmem:[%s721_s2 + $0x28] sm:$0xff]  }
   0x5   :  { %v68_v11 = vld [vmem:[%s722_s3] sm:$0xf]  ;;  %v543_v19 = vld [vmem:[%s721_s2 + $0x70] sm:$0xff]   ;;  %v550_v21 = vld [vmem:[%s725_s5 + $0x8] sm:$0xff]  }
   0x6   :  { %v75_v13 = vsel %vm73_vm1, %v68_v11, 0  ;;  %v34_v14 = vld [vmem:[%s723_s0] sm:$0xff]  ;;  %v544_v20 = vld [vmem:[%s721_s2 + $0x30] sm:$0xff]   ;;  %v545_v22 = vld [vmem:[%s721_s2 + $0x78] sm:$0xff]  }
   0x7   :  { %467 = vmatpush3.bf16.msra.mxu1 %v534_v4  ;;  %v67_v15 = vld [vmem:[%s724_s1] sm:$0xf]  ;;  %498 = vmatpush3.bf16.msra.mxu0 %v75_v13  ;;  %v435_v16 = vcombine.high %v34_v14, %v34_v14  ;;  %v551_v23 = vld [vmem:[%s725_s5 + $0x10] sm:$0xff]   ;;  %v546_v24 = vld [vmem:[%s721_s2 + $0x38] sm:$0xff]   ;;  %v434_v26 = vcombine.low %v34_v14, %v34_v14 }
   0x8   :  { %468 = vmatprep.subr.bf16.mxu1 %v535_v5  ;;  %v549_v17 = vld [vmem:[%s725_s5] sm:$0xff]   ;;  %503 = vmatprep.subr.bf16.mxu0 %v557_v1  ;;  %v552_v25 = vld [vmem:[%s725_s5 + $0x18] sm:$0xff]   ;;  %v554_v28 = vld [vmem:[%s725_s5 + $0x28] sm:$0xff]  }
   0x9   :  { %252 = vmatprep.mubr.bf16.mxu1 %v435_v16  ;;  %v553_v27 = vld [vmem:[%s725_s5 + $0x20] sm:$0xff]   ;;  %v555_v29 = vld [vmem:[%s725_s5 + $0x30] sm:$0xff]   ;;  %v556_v30 = vld [vmem:[%s725_s5 + $0x38] sm:$0xff]  }
   0xa   :  { %500 = vmatmul.mubr.msk.bf16.vlgmr.msra.gmra.mrb[0].mxu0 %vm69_vm2, %v67_v15  ;;  %v452_v39 = vld [vmem:[%s726_s4] ss:$0 sm:$0xff] }
   0xb   :  { %469 = vmatpush3.bf16.msra.mxu1 %v536_v6  ;;  %504 = vmatpush3.bf16.msra.mxu0 %v549_v17  ;;  %v453_v45 = vld [vmem:[%s727_s6] ss:$0 sm:$0xff] }
   0xc   :  { %470 = vmatprep.subr.bf16.mxu1 %v537_v7  ;;  %519 = vmatprep.mubr.msk.bf16.mxu0 %vm558_vm0, %v557_v1  ;;  %v382_v53 = vld [vmem:[%s728_s7] sm:$0xf] }
   0xd   :  { %505 = vmatprep.subr.bf16.mxu0 %v557_v1 }
   0xf   :  { %471 = vmatpush3.bf16.msra.mxu1 %v538_v8  ;;  %506 = vmatpush3.bf16.msra.mxu0 %v550_v21 }
  0x10   :  { %472 = vmatprep.subr.bf16.mxu1 %v539_v9  ;;  %507 = vmatprep.subr.bf16.mxu0 %v557_v1 }
  0x13   :  { %473 = vmatpush3.bf16.msra.mxu1 %v540_v10  ;;  %508 = vmatpush3.bf16.msra.mxu0 %v551_v23 }
  0x14   :  { %474 = vmatprep.subr.bf16.mxu1 %v541_v12  ;;  %509 = vmatprep.subr.bf16.mxu0 %v557_v1 }
  0x17   :  { %475 = vmatpush3.bf16.msra.mxu1 %v542_v18  ;;  %510 = vmatpush3.bf16.msra.mxu0 %v552_v25 }
  0x18   :  { %476 = vmatprep.subr.bf16.mxu1 %v543_v19  ;;  %511 = vmatprep.subr.bf16.mxu0 %v557_v1 }
  0x1b   :  { %477 = vmatpush3.bf16.msra.mxu1 %v544_v20  ;;  %512 = vmatpush3.bf16.msra.mxu0 %v553_v27 }
  0x1c   :  { %478 = vmatprep.subr.bf16.mxu1 %v545_v22  ;;  %513 = vmatprep.subr.bf16.mxu0 %v557_v1 }
  0x1f   :  { %479 = vmatpush3.bf16.msra.mxu1 %v546_v24  ;;  %514 = vmatpush3.bf16.msra.mxu0 %v554_v28 }
  0x20   :  { %523 = vmatprep.subr.bf16.mxu1 %v557_v1  ;;  %515 = vmatprep.subr.bf16.mxu0 %v557_v1 }
  0x22   :  { %253 = vmatmul.mubr.bf16.vlgmr.msra.gmra.mrb[0].mxu1 %v434_v26 }
  0x23   :  { %525 = vmatprep.mubr.msk.bf16.mxu1 %vm558_vm0, %v557_v1  ;;  %516 = vmatpush3.bf16.msra.mxu0 %v555_v29 }
  0x24   :  { %517 = vmatprep.subr.bf16.mxu0 %v557_v1 }
  0x27   :  { %518 = vmatpush3.bf16.msra.mxu0 %v556_v30 }
  0xdd   :  { %v111_v31 = vpop.f32.mrb[0].mxu0 }
  0xde   :  { %v501_v32 = vpop.f32.mrb[1].mxu0 }
  0xdf   :  { %v114_v33 = vpop.f32.mrb[2].mxu0 }
  0xe0   :  { %v502_v34 = vpop.f32.mrb[3].mxu0 }
  0xf5   :  { %v480_v35 = vpop.f32.mrb[0].mxu1 }
  0xf6   :  { %v481_v36 = vpop.f32.mrb[1].mxu1 }
  0xf7   :  { %v482_v37 = vadd.f32 %v481_v36, %v480_v35  ;;  %v483_v38 = vpop.f32.mrb[2].mxu1 }
  0xf8   :  { %v484_v40 = vpop.f32.mrb[3].mxu1 }
  0xf9   :  { %v255_v41 = vadd.f32 %v482_v37, %v111_v31 }
  0xfb   :  { %v267_v42 = vadd.f32 %v452_v39, %v255_v41 }
  0xfd   :  { %v268_v43 = vmax.f32 %v267_v42, 0.0 }
  0xff   :  { %v269_v44 = vpack.c.bf16 %v268_v43, %v268_v43 }
 0x101   :  { %520 = vmatmul.mubr.bf16.vlgmr.msra.gmra.mrb[4].mxu0 %v269_v44 }
 0x1d4   :  { %v375_v46 = vpop.f32.mrb[4].mxu0 }
 0x1d5   :  { %v376_v47 = vadd.f32 %v453_v45, %v375_v46  ;;  %v521_v48 = vpop.f32.mrb[5].mxu0 }
 0x1d6   :  { %v378_v49 = vpop.f32.mrb[6].mxu0 }
 0x1d7   :  { %v381_v50 = vmax.f32 %v376_v47, 0.0  ;;  %v522_v51 = vpop.f32.mrb[7].mxu0 }
 0x1d9   :  { %v383_v52 = vpack.c.bf16 %v381_v50, %v381_v50 }
 0x1db   :  { %524 = vmatpush3.bf16.xpose.msra.mxu1 %v383_v52 }
 0x1e2   :  { %526 = vmatmul.mubr.bf16.vlgmr.msra.gmra.mrb[4].mxu1 %v382_v53 }
 0x2b5   :  { %v418_v55 = vpop.f32.mrb[4].mxu1 }
 0x2b6   :  { %v426_v56 = vadd.f32 %v425_v54, %v418_v55  ;;  %v527_v57 = vpop.f32.mrb[5].mxu1 }
 0x2b7   :  { %v421_v58 = vpop.f32.mrb[6].mxu1 }
 0x2b8   :  { %428 = vst.msk [vmem:[%s730_s9] sm:$0x1] %vm427_vm3, %v426_v56  ;;  %v528_v59 = vpop.f32.mrb[7].mxu1 }

</bundles_post_ra>
